<compile_context>
chip_gen: v7x
topology: tpu7x:2x2x1
jax: 0.10.0
libtpu: 0.0.40
codegen_flags: <defaults>
</compile_context>

<pallas_src>
import functools

import jax
import jax.numpy as jnp
from jax import lax
from jax.experimental import pallas as pl
from jax.experimental.pallas import tpu as pltpu

_NORM_EPS = 1e-12          # matches torch.nn.functional.normalize default eps
_NEG_BIG = -1e30           # finite "-inf" (never produces NaN arithmetic)
_DEFAULT_MAX_ROWS = 512    # row/key tile; 256-512 keeps v7x VMEM comfortable


def _round_up(x, m):
    return ((x + m - 1) // m) * m


def _info_nce_kernel(q_ref, k_ref, out_ref, qn_ref, m_ref, l_ref, pos_ref, *,
                     n_rows, inv_temp, out_scale, compute_dtype, need_mask):
    i = pl.program_id(0)              # query-row tile
    j = pl.program_id(1)              # streamed key-row (logit-column) tile
    last_j = pl.num_programs(1) - 1
    tq = q_ref.shape[0]
    tk = k_ref.shape[0]

    @pl.when(j == 0)
    def _init():
        # Normalize this query tile once per row tile; fold 1/temperature in.
        q = q_ref[...].astype(jnp.float32)
        inv_q = lax.rsqrt(jnp.maximum(jnp.sum(q * q, axis=-1, keepdims=True),
                                      jnp.float32(_NORM_EPS * _NORM_EPS)))
        qn_ref[...] = q * (inv_q * jnp.float32(inv_temp))
        m_ref[...] = jnp.full_like(m_ref, _NEG_BIG)
        l_ref[...] = jnp.zeros_like(l_ref)
        pos_ref[...] = jnp.zeros_like(pos_ref)

    # Normalize the streamed key block (f32 on VPU/EUP).
    k = k_ref[...].astype(jnp.float32)
    inv_k = lax.rsqrt(jnp.maximum(jnp.sum(k * k, axis=-1, keepdims=True),
                                  jnp.float32(_NORM_EPS * _NORM_EPS)))
    kn = k * inv_k

    qn = qn_ref[...]

    # Logits block (tq, tk) on the MXU; 1/temperature already folded into qn.
    s = lax.dot_general(qn.astype(compute_dtype), kn.astype(compute_dtype),
                        dimension_numbers=(((1,), (1,)), ((), ())),
                        preferred_element_type=jnp.float32)

    if need_mask:
        col_valid = (j * tk + lax.broadcasted_iota(jnp.int32, (1, tk), 1)) < n_rows
        s = jnp.where(col_valid, s, jnp.float32(_NEG_BIG))

    # The positive (diagonal) logits for row tile i live in key block j == i.
    @pl.when(j == i)
    def _positive():
        pos_ref[...] = jnp.sum(qn * kn, axis=-1, keepdims=True)

    # Online (flash-style) logsumexp update.
    m_prev = m_ref[...]
    m_new = jnp.maximum(m_prev, jnp.max(s, axis=-1, keepdims=True))
    alpha = jnp.exp(m_prev - m_new)
    l_ref[...] = alpha * l_ref[...] + jnp.sum(jnp.exp(s - m_new), axis=-1,
                                              keepdims=True)
    m_ref[...] = m_new

    @pl.when(j == last_j)
    def _finalize():
        per_row = m_ref[...] + jnp.log(l_ref[...]) - pos_ref[...]
        if need_mask:
            row_valid = (i * tq
                         + lax.broadcasted_iota(jnp.int32, (tq, 1), 0)) < n_rows
            per_row = jnp.where(row_valid, per_row, 0.0)
        total = jnp.sum(per_row, axis=0, keepdims=True) * jnp.float32(out_scale)
        # Lane-dense per-tile partial output block (summed by the wrapper).
        out_ref[...] = jnp.broadcast_to(total, out_ref.shape)


def info_nce_loss(query, positive_key, negative_keys=None, temperature=0.1,
                  reduction="mean", block_rows=None):
    """InfoNCE loss with in-batch negatives (negative_keys=None path)."""
    if query.ndim != 2 or positive_key.ndim != 2:
        raise ValueError("query and positive_key must be 2D (N, D).")
    if query.shape[0] != positive_key.shape[0]:
        raise ValueError("query and positive_key must have the same number of samples.")
    if query.shape[1] != positive_key.shape[1]:
        raise ValueError("query and positive_key must have the same number of components.")
    if negative_keys is not None:
        # TODO(synk): explicit negative_keys path (paired positive logit + q @ neg.T)
        # is not implemented as a Pallas kernel.
        raise NotImplementedError("negative_keys path is not implemented.")
    if reduction not in ("mean", "sum"):
        # TODO(synk): reduction='none' needs a per-row vector output; not implemented.
        raise NotImplementedError("only reduction in {'mean', 'sum'} is supported.")

    n, d = query.shape

    # Row/key tile: large enough to amortize per-step overhead, small enough
    # that logits + exp temporaries stay in a few MiB (v7x-safe).
    if block_rows is None:
        block_rows = _DEFAULT_MAX_ROWS if d <= 2048 else 256
    tile = min(_round_up(n, 8), _round_up(int(block_rows), 8))
    padded_n = _round_up(n, tile)
    need_mask = padded_n != n
    if need_mask:
        pad = ((0, padded_n - n), (0, 0))
        query = jnp.pad(query, pad)
        positive_key = jnp.pad(positive_key, pad)
    g = padded_n // tile

    # MXU operand dtype: native bf16 path for bf16 inputs, exact f32 otherwise.
    compute_dtype = jnp.bfloat16 if query.dtype == jnp.bfloat16 else jnp.float32
    out_scale = (1.0 / n) if reduction == "mean" else 1.0

    in_bytes = jnp.dtype(query.dtype).itemsize
    vmem_bytes = (
        2 * tile * d * in_bytes        # query tile (double-buffered)
        + 2 * tile * d * in_bytes      # streamed key tile (double-buffered)
        + tile * d * 4                 # normalized-query scratch (f32)
        + 3 * tile * 4                 # m / l / pos scratch
        + 2 * 8 * 128 * 4              # per-tile partial output block
        + 6 * tile * tile * 4          # logits + exp temporaries headroom
        + (4 << 20)                    # misc headroom
    )
    vmem_limit = int(min(max(vmem_bytes, 16 << 20), 48 << 20))

    kernel = functools.partial(
        _info_nce_kernel,
        n_rows=n,
        inv_temp=float(1.0 / temperature),
        out_scale=float(out_scale),
        compute_dtype=compute_dtype,
        need_mask=need_mask,
    )

    partials = pl.pallas_call(
        kernel,
        out_shape=jax.ShapeDtypeStruct((g * 8, 128), jnp.float32),
        grid_spec=pltpu.PrefetchScalarGridSpec(
            num_scalar_prefetch=0,
            grid=(g, g),                                        # (row tiles, key tiles)
            in_specs=[
                pl.BlockSpec((tile, d), lambda i, j: (i, 0)),   # query row tile
                pl.BlockSpec((tile, d), lambda i, j: (j, 0)),   # streamed key tile
            ],
            out_specs=pl.BlockSpec((8, 128), lambda i, j: (i, 0)),
            scratch_shapes=[
                pltpu.VMEM((tile, d), jnp.float32),   # qn (1/temperature folded in)
                pltpu.VMEM((tile, 1), jnp.float32),   # running row max
                pltpu.VMEM((tile, 1), jnp.float32),   # running sum of exp
                pltpu.VMEM((tile, 1), jnp.float32),   # positive (diagonal) logit
            ],
        ),
        compiler_params=pltpu.CompilerParams(
            # Row tiles are independent -> shard across v7x's 2 TensorCores;
            # the streamed-key axis carries the online-softmax state -> arbitrary.
            dimension_semantics=("parallel", "arbitrary"),
            vmem_limit_bytes=vmem_limit,
        ),
    )(query, positive_key)

    # Each (8, 128) output block is filled with that row tile's partial loss.
    return jnp.sum(partials[::8, 0])


def _reference_info_nce(query, positive_key, temperature=0.1):
    q = query.astype(jnp.float32)
    p = positive_key.astype(jnp.float32)
    qn = q / jnp.maximum(jnp.linalg.norm(q, axis=-1, keepdims=True), _NORM_EPS)
    pn = p / jnp.maximum(jnp.linalg.norm(p, axis=-1, keepdims=True), _NORM_EPS)
    logits = (qn @ pn.T) / temperature
    logp = jax.nn.log_softmax(logits, axis=-1)
    labels = jnp.arange(q.shape[0])
    return -jnp.mean(logp[labels, labels])


if __name__ == "__main__":
    key = jax.random.PRNGKey(0)
    kq1, kp1, kq2, kp2 = jax.random.split(key, 4)

    # Case 1: small aligned batch (N=8, D=32) — single grid step.
    q1 = jax.random.normal(kq1, (8, 32), dtype=jnp.float32)
    p1 = jax.random.normal(kp1, (8, 32), dtype=jnp.float32)
    loss1 = jax.block_until_ready(info_nce_loss(q1, p1, temperature=0.1))
    ref1 = jax.block_until_ready(_reference_info_nce(q1, p1, temperature=0.1))
    assert jnp.allclose(loss1, ref1, rtol=1e-4, atol=1e-4), (loss1, ref1)

    # Case 2: non-aligned batch with a tiny row tile — exercises padding masks,
    # the streamed key-block axis and the online logsumexp across 4x4 steps.
    q2 = jax.random.normal(kq2, (30, 32), dtype=jnp.float32)
    p2 = jax.random.normal(kp2, (30, 32), dtype=jnp.float32)
    loss2 = jax.block_until_ready(
        info_nce_loss(q2, p2, temperature=0.1, block_rows=8))
    ref2 = jax.block_until_ready(_reference_info_nce(q2, p2, temperature=0.1))
    assert jnp.allclose(loss2, ref2, rtol=1e-4, atol=1e-4), (loss2, ref2)

    print("KERNEL_OK")
</pallas_src>

<mosaic_0001>
module attributes {stable_mosaic.version = 11 : i64} {
  func.func @_info_nce_kernel(%arg0: i32, %arg1: i32, %arg2: memref<8x32xf32, #tpu.memory_space<vmem>>, %arg3: memref<8x32xf32, #tpu.memory_space<vmem>>, %arg4: memref<8x128xf32, #tpu.memory_space<vmem>>, %arg5: memref<8x32xf32, #tpu.memory_space<vmem>>, %arg6: memref<8x1xf32, #tpu.memory_space<vmem>>, %arg7: memref<8x1xf32, #tpu.memory_space<vmem>>, %arg8: memref<8x1xf32, #tpu.memory_space<vmem>>) attributes {dimension_semantics = [#tpu.dimension_semantics<parallel>, #tpu.dimension_semantics<arbitrary>], iteration_bounds = array<i64: 1, 1>, scalar_prefetch = 0 : i64, scratch_operands = 4 : i64, tpu.core_type = #tpu.core_type<tc>, window_params = [{transform_indices = @transform_0, window_bounds = array<i64: 8, 32>}, {transform_indices = @transform_1, window_bounds = array<i64: 8, 32>}, {transform_indices = @transform_2, window_bounds = array<i64: 8, 128>}]} {
    %c0_i32 = arith.constant 0 : i32
    %0 = arith.cmpi eq, %arg1, %c0_i32 : i32
    %1 = arith.extui %0 : i1 to i32
    %c0_i32_0 = arith.constant 0 : i32
    %2 = arith.cmpi ne, %1, %c0_i32_0 : i32
    scf.if %2 {
      %c0_19 = arith.constant 0 : index
      %c0_20 = arith.constant 0 : index
      %36 = vector.load %arg2[%c0_19, %c0_20] : memref<8x32xf32, #tpu.memory_space<vmem>>, vector<8x32xf32>
      %37 = arith.mulf %36, %36 : vector<8x32xf32>
      %cst_21 = arith.constant dense<0.000000e+00> : vector<8xf32>
      %38 = vector.multi_reduction <add>, %37, %cst_21 [1] : vector<8x32xf32> to vector<8xf32>
      %39 = vector.shape_cast %38 : vector<8xf32> to vector<8x1xf32>
      %cst_22 = arith.constant 1.000000e-24 : f32
      %40 = vector.broadcast %cst_22 : f32 to vector<8x1xf32>
      %41 = arith.maximumf %39, %40 : vector<8x1xf32>
      %42 = math.rsqrt %41 : vector<8x1xf32>
      %cst_23 = arith.constant 1.000000e+01 : f32
      %43 = vector.broadcast %cst_23 : f32 to vector<8x1xf32>
      %44 = arith.mulf %42, %43 : vector<8x1xf32>
      %45 = vector.broadcast %44 : vector<8x1xf32> to vector<8x32xf32>
      %46 = arith.mulf %36, %45 : vector<8x32xf32>
      %c0_24 = arith.constant 0 : index
      %c0_25 = arith.constant 0 : index
      %47 = vector.load %arg5[%c0_24, %c0_25] : memref<8x32xf32, #tpu.memory_space<vmem>>, vector<8x32xf32>
      tpu.vector_store %arg5[%c0_24, %c0_25], %46 {strides = array<i32>} : memref<8x32xf32, #tpu.memory_space<vmem>>, vector<8x32xf32>,
      %cst_26 = arith.constant -1.000000e+30 : f32
      %48 = vector.broadcast %cst_26 : f32 to vector<8x1xf32>
      %c0_27 = arith.constant 0 : index
      %c0_28 = arith.constant 0 : index
      %49 = vector.load %arg6[%c0_27, %c0_28] : memref<8x1xf32, #tpu.memory_space<vmem>>, vector<8x1xf32>
      tpu.vector_store %arg6[%c0_27, %c0_28], %48 {strides = array<i32>} : memref<8x1xf32, #tpu.memory_space<vmem>>, vector<8x1xf32>,
      %cst_29 = arith.constant 0.000000e+00 : f32
      %50 = vector.broadcast %cst_29 : f32 to vector<8x1xf32>
      %c0_30 = arith.constant 0 : index
      %c0_31 = arith.constant 0 : index
      %51 = vector.load %arg7[%c0_30, %c0_31] : memref<8x1xf32, #tpu.memory_space<vmem>>, vector<8x1xf32>
      tpu.vector_store %arg7[%c0_30, %c0_31], %50 {strides = array<i32>} : memref<8x1xf32, #tpu.memory_space<vmem>>, vector<8x1xf32>,
      %cst_32 = arith.constant 0.000000e+00 : f32
      %52 = vector.broadcast %cst_32 : f32 to vector<8x1xf32>
      %c0_33 = arith.constant 0 : index
      %c0_34 = arith.constant 0 : index
      %53 = vector.load %arg8[%c0_33, %c0_34] : memref<8x1xf32, #tpu.memory_space<vmem>>, vector<8x1xf32>
      tpu.vector_store %arg8[%c0_33, %c0_34], %52 {strides = array<i32>} : memref<8x1xf32, #tpu.memory_space<vmem>>, vector<8x1xf32>,
    } else {
    }
    %c0 = arith.constant 0 : index
    %c0_1 = arith.constant 0 : index
    %3 = vector.load %arg3[%c0, %c0_1] : memref<8x32xf32, #tpu.memory_space<vmem>>, vector<8x32xf32>
    %4 = arith.mulf %3, %3 : vector<8x32xf32>
    %cst = arith.constant dense<0.000000e+00> : vector<8xf32>
    %5 = vector.multi_reduction <add>, %4, %cst [1] : vector<8x32xf32> to vector<8xf32>
    %6 = vector.shape_cast %5 : vector<8xf32> to vector<8x1xf32>
    %cst_2 = arith.constant 1.000000e-24 : f32
    %7 = vector.broadcast %cst_2 : f32 to vector<8x1xf32>
    %8 = arith.maximumf %6, %7 : vector<8x1xf32>
    %9 = math.rsqrt %8 : vector<8x1xf32>
    %10 = vector.broadcast %9 : vector<8x1xf32> to vector<8x32xf32>
    %11 = arith.mulf %3, %10 : vector<8x32xf32>
    %c0_3 = arith.constant 0 : index
    %c0_4 = arith.constant 0 : index
    %12 = vector.load %arg5[%c0_3, %c0_4] : memref<8x32xf32, #tpu.memory_space<vmem>>, vector<8x32xf32>
    %cst_5 = arith.constant dense<0.000000e+00> : vector<8x8xf32>
    %13 = tpu.matmul %12, %11, %cst_5 {dimension_numbers = #tpu.dot_dimension_numbers<[1], [1], [0], [0], [0, 0, 1, 0], [], []>} : vector<8x32xf32>, vector<8x32xf32>, vector<8x8xf32> -> vector<8x8xf32>
    %14 = arith.cmpi eq, %arg1, %arg0 : i32
    %15 = arith.extui %14 : i1 to i32
    %c0_i32_6 = arith.constant 0 : i32
    %16 = arith.cmpi ne, %15, %c0_i32_6 : i32
    scf.if %16 {
      %36 = arith.mulf %12, %11 : vector<8x32xf32>
      %cst_19 = arith.constant dense<0.000000e+00> : vector<8xf32>
      %37 = vector.multi_reduction <add>, %36, %cst_19 [1] : vector<8x32xf32> to vector<8xf32>
      %38 = vector.shape_cast %37 : vector<8xf32> to vector<8x1xf32>
      %c0_20 = arith.constant 0 : index
      %c0_21 = arith.constant 0 : index
      %39 = vector.load %arg8[%c0_20, %c0_21] : memref<8x1xf32, #tpu.memory_space<vmem>>, vector<8x1xf32>
      tpu.vector_store %arg8[%c0_20, %c0_21], %38 {strides = array<i32>} : memref<8x1xf32, #tpu.memory_space<vmem>>, vector<8x1xf32>,
    } else {
    }
    %c0_7 = arith.constant 0 : index
    %c0_8 = arith.constant 0 : index
    %17 = vector.load %arg6[%c0_7, %c0_8] : memref<8x1xf32, #tpu.memory_space<vmem>>, vector<8x1xf32>
    %cst_9 = arith.constant dense<0xFF800000> : vector<8xf32>
    %18 = vector.multi_reduction <maximumf>, %13, %cst_9 [1] : vector<8x8xf32> to vector<8xf32>
    %19 = vector.shape_cast %18 : vector<8xf32> to vector<8x1xf32>
    %20 = arith.maximumf %17, %19 : vector<8x1xf32>
    %21 = arith.subf %17, %20 : vector<8x1xf32>
    %22 = math.exp %21 : vector<8x1xf32>
    %c0_10 = arith.constant 0 : index
    %c0_11 = arith.constant 0 : index
    %23 = vector.load %arg7[%c0_10, %c0_11] : memref<8x1xf32, #tpu.memory_space<vmem>>, vector<8x1xf32>
    %24 = arith.mulf %22, %23 : vector<8x1xf32>
    %25 = vector.broadcast %20 : vector<8x1xf32> to vector<8x8xf32>
    %26 = arith.subf %13, %25 : vector<8x8xf32>
    %27 = math.exp %26 : vector<8x8xf32>
    %cst_12 = arith.constant dense<0.000000e+00> : vector<8xf32>
    %28 = vector.multi_reduction <add>, %27, %cst_12 [1] : vector<8x8xf32> to vector<8xf32>
    %29 = vector.shape_cast %28 : vector<8xf32> to vector<8x1xf32>
    %30 = arith.addf %24, %29 : vector<8x1xf32>
    %c0_13 = arith.constant 0 : index
    %c0_14 = arith.constant 0 : index
    %31 = vector.load %arg7[%c0_13, %c0_14] : memref<8x1xf32, #tpu.memory_space<vmem>>, vector<8x1xf32>
    tpu.vector_store %arg7[%c0_13, %c0_14], %30 {strides = array<i32>} : memref<8x1xf32, #tpu.memory_space<vmem>>, vector<8x1xf32>,
    %c0_15 = arith.constant 0 : index
    %c0_16 = arith.constant 0 : index
    %32 = vector.load %arg6[%c0_15, %c0_16] : memref<8x1xf32, #tpu.memory_space<vmem>>, vector<8x1xf32>
    tpu.vector_store %arg6[%c0_15, %c0_16], %20 {strides = array<i32>} : memref<8x1xf32, #tpu.memory_space<vmem>>, vector<8x1xf32>,
    %c0_i32_17 = arith.constant 0 : i32
    %33 = arith.cmpi eq, %arg1, %c0_i32_17 : i32
    %34 = arith.extui %33 : i1 to i32
    %c0_i32_18 = arith.constant 0 : i32
    %35 = arith.cmpi ne, %34, %c0_i32_18 : i32
    scf.if %35 {
      %c0_19 = arith.constant 0 : index
      %c0_20 = arith.constant 0 : index
      %36 = vector.load %arg6[%c0_19, %c0_20] : memref<8x1xf32, #tpu.memory_space<vmem>>, vector<8x1xf32>
      %c0_21 = arith.constant 0 : index
      %c0_22 = arith.constant 0 : index
      %37 = vector.load %arg7[%c0_21, %c0_22] : memref<8x1xf32, #tpu.memory_space<vmem>>, vector<8x1xf32>
      %38 = math.log %37 : vector<8x1xf32>
      %39 = arith.addf %36, %38 : vector<8x1xf32>
      %c0_23 = arith.constant 0 : index
      %c0_24 = arith.constant 0 : index
      %40 = vector.load %arg8[%c0_23, %c0_24] : memref<8x1xf32, #tpu.memory_space<vmem>>, vector<8x1xf32>
      %41 = arith.subf %39, %40 : vector<8x1xf32>
      %cst_25 = arith.constant dense<0.000000e+00> : vector<1xf32>
      %42 = vector.multi_reduction <add>, %41, %cst_25 [0] : vector<8x1xf32> to vector<1xf32>
      %43 = vector.shape_cast %42 : vector<1xf32> to vector<1x1xf32>
      %cst_26 = arith.constant 1.250000e-01 : f32
      %44 = vector.broadcast %cst_26 : f32 to vector<1x1xf32>
      %45 = arith.mulf %43, %44 : vector<1x1xf32>
      %46 = vector.shape_cast %45 : vector<1x1xf32> to vector<1x1xf32>
      %47 = vector.broadcast %46 : vector<1x1xf32> to vector<8x128xf32>
      %c0_27 = arith.constant 0 : index
      %c0_28 = arith.constant 0 : index
      %48 = vector.load %arg4[%c0_27, %c0_28] : memref<8x128xf32, #tpu.memory_space<vmem>>, vector<8x128xf32>
      tpu.vector_store %arg4[%c0_27, %c0_28], %47 {strides = array<i32>} : memref<8x128xf32, #tpu.memory_space<vmem>>, vector<8x128xf32>,
    } else {
    }
    return
  }
  func.func @transform_0(%arg0: i32, %arg1: i32) -> (i32, i32) {
    %c0_i32 = arith.constant 0 : i32
    %c0_i32_0 = arith.constant 0 : i32
    return %arg0, %c0_i32 : i32, i32
  }
  func.func @transform_1(%arg0: i32, %arg1: i32) -> (i32, i32) {
    %c0_i32 = arith.constant 0 : i32
    %c0_i32_0 = arith.constant 0 : i32
    return %arg1, %c0_i32 : i32, i32
  }
  func.func @transform_2(%arg0: i32, %arg1: i32) -> (i32, i32) {
    %c0_i32 = arith.constant 0 : i32
    %c0_i32_0 = arith.constant 0 : i32
    return %arg0, %c0_i32 : i32, i32
  }
}

</mosaic_0001>

<bundles_post_ra>
// kernel: tpu_custom_call.1
= control target key start
LH: loop header
LB: loop body
LE: loop exit
PB: predicated region body
PF: predicated region fallthrough
CT: control target
= control target key end

     0   :  { %7 = vsyncpa [#allocation7], 0  ;;  %s390_s0 = inlined_call_operand.hbm [shape: f32[8,32], index: 0, kind: input, shape index: {}]   ;;  %s391_s1 = inlined_call_operand.hbm [shape: f32[8,32], index: 1, kind: input, shape index: {}]   ;;  %s392_s2 = inlined_call_operand.hbm [shape: f32[8,128], index: 2, kind: output, shape index: {}]  }
   0x1   :  { %8 = vsyncpa [#allocation10], 0 }
   0x2   :  { %9 = vsyncpa [#allocation8], 0  ;;  %s317_s9 = smov [#allocation6]   ;;  %s318_s11 = smov [#allocation9]  }
   0x3   :  { %s16_s10 = sshll.u32 %s317_s9, 4  ;;  %s26_s12 = sshll.u32 %s318_s11, 4  ;;  %s17_s10 = int_to_ptr.vmem [resolvable:$true] %s16_s10  ;;  %s27_s12 = int_to_ptr.vmem [resolvable:$true] %s26_s12 }
   0x4   :  { %s245_s15 = scalar_lea.hbm %s390_s0, 128 }
   0x5   :  { %p246_p0 = scmp.ne.s32.totalorder %s390_s0, %s245_s15  ;;  %p249_p1 = scmp.lt.u32.totalorder %s245_s15, %s390_s0 }
   0x7   :  { %p251_p2 = pnand %p249_p1, %p246_p0 }
   0x9   :  { %254 = shalt.err (!%p251_p2)
}
   0xa   :  { %s255_s20 = scalar_lea.vmem %s17_s10, 128  ;;  %p260_p4 = scmp.lt.s32.totalorder %s17_s10, %s17_s10 }
   0xb   :  { %p256_p3 = scmp.ne.s32.totalorder %s17_s10, %s255_s20  ;;  %p261_p5 = scmp.lt.s32.totalorder %s255_s20, %s255_s20 }
   0xd   :  { %p262_p6 = por %p261_p5, %p260_p4 }
   0xf   :  { %p263_p7 = pnand %p262_p6, %p256_p3 }
  0x11   :  { %266 = shalt.err (!%p263_p7)
}
  0x12   :  { %19 = dma.hbm_to_vmem [thread:$0]  %s390_s0, 128, %s17_s10, [#allocation7]  }
  0x13   :  { %s267_s25 = scalar_lea.hbm %s391_s1, 128 }
  0x14   :  { %p268_p8 = scmp.ne.s32.totalorder %s391_s1, %s267_s25  ;;  %p271_p9 = scmp.lt.u32.totalorder %s267_s25, %s391_s1 }
  0x16   :  { %p273_p10 = pnand %p271_p9, %p268_p8 }
  0x18   :  { %276 = shalt.err (!%p273_p10)
}
  0x19   :  { %s277_s30 = scalar_lea.vmem %s27_s12, 128  ;;  %p282_p12 = scmp.lt.s32.totalorder %s27_s12, %s27_s12 }
  0x1a   :  { %p278_p11 = scmp.ne.s32.totalorder %s27_s12, %s277_s30  ;;  %p283_p13 = scmp.lt.s32.totalorder %s277_s30, %s277_s30 }
  0x1c   :  { %p284_p0 = por %p283_p13, %p282_p12 }
  0x1e   :  { %p285_p1 = pnand %p284_p0, %p278_p11 }
  0x20   :  { %288 = shalt.err (!%p285_p1)
}
  0x21   :  { %29 = dma.hbm_to_vmem [thread:$0]  %s391_s1, 128, %s27_s12, [#allocation10]  }
  0x22   :  { %311 = dma.done.wait [#allocation7], 128  }
  0x23   :  { %312 = vsyncadd [#allocation7], 4294967168 }
  0x24   :  { %313 = dma.done.wait [#allocation10], 128  }
  0x25   :  { %314 = vsyncadd [#allocation10], 4294967168  ;;  %v40_v0 = vld [vmem:[#allocation6] sm:$0xff]  ;;  %vm42_vm0 = vcmask 261120   ;;  %v55_v1 = vld [vmem:[#allocation9] sm:$0xff]  ;;  %vm51_vm1 = vcmask 7168  }
  0x26   :  { %v41_v2 = vmul.f32 %v40_v0, %v40_v0  ;;  %v56_v3 = vmul.f32 %v55_v1, %v55_v1  ;;  %v319_v6 = vmov 0.0   ;;  %vm320_vm2 = vmmov 0   ;;  %s323_s1 = smov [#allocation11]  }
  0x27   :  { %53 = vst.msk [vmem:[#allocation4] sm:$0xff] %vm51_vm1, %v319_v6  ;;  %221 = vmatprep.subr.mxu0 %v319_v6  ;;  %54 = vst.msk [vmem:[#allocation5] sm:$0xff] %vm51_vm1, %v319_v6  ;;  %223 = vmatprep.mubr.msk.f32.mxu0 %vm320_vm2, %v319_v6  ;;  %v321_v18 = vmov -1e+30   ;;  %vm152_vm3 = vcmask 64512   ;;  %v322_v22 = vmov 0  }
  0x28   :  { %v43_v4 = vsel %vm42_vm0, %v41_v2, 0.0  ;;  %v58_v5 = vsel %vm42_vm0, %v56_v3, 0.0  ;;  %52 = vst.msk [vmem:[#allocation3] sm:$0xff] %vm51_vm1, %v321_v18  ;;  %233 = vset.pattern.permute.xlu1 %v322_v22  ;;  %234 = vset.pattern.permute.xlu0 %v322_v22  ;;  %s207_s4 = sshll.u32 %s323_s1, 4  ;;  %s208_s4 = int_to_ptr.vmem [resolvable:$true] %s207_s4 }
  0x29   :  { %44 = vadd.xlane.f32.xlu0 %v43_v4  ;;  %s289_s5 = scalar_lea.vmem %s208_s4, 128  ;;  %p294_p3 = scmp.lt.s32.totalorder %s208_s4, %s208_s4 }
  0x2a   :  { %p290_p2 = scmp.ne.s32.totalorder %s208_s4, %s289_s5  ;;  %p295_p4 = scmp.lt.s32.totalorder %s289_s5, %s289_s5 }
  0x2c   :  { %p296_p5 = por %p295_p4, %p294_p3 }
  0x2d   :  { %59 = vadd.xlane.f32.xlu0 %v58_v5 }
  0x2e   :  { %v160_v35 = vld [vmem:[#allocation4] sm:$0xff]  ;;  %p297_p6 = pnand %p296_p5, %p290_p2 }
  0x2f   :  { %v151_v23 = vld [vmem:[#allocation3] sm:$0xff] }
  0xb6   :  { %v45_v7 = vpop.xlane.xlu0 %44 }
  0xb7   :  { %v46_v8 = vmax.f32 %v45_v7, 1e-24 }
  0xb9   :  { %235 = vrsqrt.f32 %v46_v8 }
  0xba   :  { %v60_v9 = vpop.xlane.xlu0 %59 }
  0xbb   :  { %v61_v10 = vmax.f32 %v60_v9, 1e-24 }
  0xbd   :  { %237 = vrsqrt.f32 %v61_v10 }
  0xc3   :  { %v236_v11 = vpop.eup %235 }
  0xc4   :  { %v48_v12 = vmul.f32 10.0, %v236_v11 }
  0xc6   :  { %v49_v13 = vmul.f32 %v48_v12, %v40_v0 }
  0xc7   :  { %v238_v14 = vpop.eup %237 }
  0xc8   :  { %50 = vst.msk [vmem:[#allocation2] sm:$0xff] %vm42_vm0, %v49_v13  ;;  %v63_v15 = vmul.f32 %v238_v14, %v55_v1 }
  0xca   :  { %222 = vmatpush3.xpose.msk.msra.mxu0 %vm42_vm0, %v63_v15 }
  0xcf   :  { %v64_v16 = vld [vmem:[#allocation2] sm:$0xff] }
  0xd0   :  { %224 = vmatmul.mubr.msk.f32.vlgmr.msra.gmra.mrb[0].mxu0 %vm42_vm0, %v64_v16  ;;  %v145_v17 = vmul.f32 %v64_v16, %v63_v15 }
  0xd2   :  { %v146_v32 = vsel %vm42_vm0, %v145_v17, 0.0 }
 0x1a3   :  { %v137_v19 = vpop.f32.mrb[0].mxu0 }
 0x1a4   :  { %v225_v20 = vpop.f32.mrb[1].mxu0  ;;  %v153_v21 = vsel %vm152_vm3, %v137_v19, -inf }
 0x1a5   :  { %154 = vmax.xlane.f32.xlu1 %v153_v21 }
 0x232   :  { %v155_v24 = vpop.xlane.xlu1 %154 }
 0x233   :  { %v156_v25 = vmax.f32 %v151_v23, %v155_v24 }
 0x235   :  { %v157_v26 = vsub.f32 %v151_v23, %v156_v25  ;;  %176 = vst.msk [vmem:[#allocation3] sm:$0xff] %vm51_vm1, %v156_v25  ;;  %164 = vperm.xlu1 %233, %v156_v25  }
 0x237   :  { %v158_v33 = vmul.f32 1.442695, %v157_v26 }
 0x23c   :  { %v180_v43 = vld [vmem:[#allocation3] sm:$0xff] }
 0x2b4   :  { %v165_v27 = vpop.permute.xlu1 %164 }
 0x2b5   :  { %v167_v28 = vsub.f32 %v137_v19, %v165_v27 }
 0x2b7   :  { %v168_v29 = vmul.f32 1.442695, %v167_v28 }
 0x2b9   :  { %239 = vpow2.f32 %v168_v29 }
 0x2ba   :  { %241 = vpow2.f32 %v158_v33 }
 0x2c3   :  { %v240_v30 = vpop.eup %239 }
 0x2c4   :  { %v170_v31 = vsel %vm152_vm3, %v240_v30, 0.0  ;;  %v242_v34 = vpop.eup %241 }
 0x2c5   :  { %171 = vadd.xlane.f32.xlu0 %v170_v31  ;;  %v161_v36 = vmul.f32 %v242_v34, %v160_v35 }
 0x2c9   :  { %147 = vadd.xlane.f32.xlu0 %v146_v32 }
 0x352   :  { %v172_v37 = vpop.xlane.xlu0 %171 }
 0x353   :  { %v173_v38 = vadd.f32 %v172_v37, %v161_v36 }
 0x355   :  { %175 = vst.msk [vmem:[#allocation4] sm:$0xff] %vm51_vm1, %v173_v38 }
 0x356   :  { %v148_v39 = vpop.xlane.xlu0 %147 }
 0x357   :  { %150 = vst.msk [vmem:[#allocation5] sm:$0xff] %vm51_vm1, %v148_v39 }
 0x35c   :  { %v181_v40 = vld [vmem:[#allocation4] sm:$0xff] }
 0x35d   :  { %243 = vlog2.f32 %v181_v40 }
 0x35e   :  { %v185_v45 = vld [vmem:[#allocation5] sm:$0xff] }
 0x367   :  { %v244_v41 = vpop.eup %243 }
 0x368   :  { %v183_v42 = vmul.f32 0.6931472, %v244_v41 }
 0x36a   :  { %v184_v44 = vadd.f32 %v183_v42, %v180_v43 }
 0x36c   :  { %v186_v46 = vsub.f32 %v184_v44, %v185_v45 }
 0x36e   :  { %v187_v47 = vsel %vm51_vm1, %v186_v46, 0.0 }
 0x36f   :  { %v188_v48 = vrot.slane %v187_v47, 4 }
 0x371   :  { %v189_v49 = vadd.f32 %v188_v48, %v187_v47 }
 0x373   :  { %v190_v50 = vrot.slane %v189_v49, 2 }
 0x375   :  { %v191_v51 = vadd.f32 %v190_v50, %v189_v49 }
 0x377   :  { %v192_v52 = vrot.slane %v191_v51, 1 }
 0x379   :  { %v193_v53 = vadd.f32 %v192_v52, %v191_v51 }
 0x37b   :  { %v194_v54 = vmul.f32 0.125, %v193_v53 }
 0x37d   :  { %197 = vperm.xlu0 %234, %v194_v54  }
 0x3fc   :  { %v198_v55 = vpop.permute.xlu0 %197 }
 0x3fd   :  { %200 = vst [vmem:[#allocation11] sm:$0xff] %v198_v55 }
 0x3fe   :  { %300 = shalt.err (!%p297_p6)
}
 0x3ff   :  { %s301_s8 = scalar_lea.hbm %s392_s2, 128 }
 0x400   :  { %p302_p7 = scmp.ne.s32.totalorder %s392_s2, %s301_s8  ;;  %p305_p8 = scmp.lt.u32.totalorder %s301_s8, %s392_s2 }
 0x402   :  { %p307_p9 = pnand %p305_p8, %p302_p7 }
 0x404   :  { %310 = shalt.err (!%p307_p9)
}
 0x405   :  { %210 = dma.vmem_to_hbm [thread:$0]  %s208_s4, 128, %s392_s2, [#allocation8]  }
 0x406   :  { %315 = dma.done.wait [#allocation8], 128  }
 0x407   :  { %316 = vsyncadd [#allocation8], 4294967168 }
 0x408   :  { %214 = vsyncpa [#allocation7], 1 }
 0x409   :  { %215 = vsyncpa [#allocation10], 1 }
 0x40a   :  { %216 = vsyncpa [#allocation8], 1 }

</bundles_post_ra>
